<compile_context>
chip_gen: v7x
topology: tpu7x:2x2x1
jax: 0.10.0
libtpu: 0.0.40
codegen_flags: <defaults>
</compile_context>

<pallas_src>
import jax
import jax.numpy as jnp
import numpy as np
from jax.experimental import pallas as pl
from jax.experimental.pallas import tpu as pltpu

BN_EPS = 1e-5


# ----------------------------------------------------------------------------
# Pallas kernel: batch-tile forward (encoder MLP, per-batch max, encoder2)
# ----------------------------------------------------------------------------
def _make_kernel(ne, F, N, Bb, cpad, ncw_out, compute_dtype):
    """ne = #encoder layers; F = feature_dim; N = points; Bb = batches/block."""
    R = Bb * N

    def kernel(x_ref, w_ref, b_ref, blast_ref, out_ref):
        # x_ref: (R, F) compute_dtype; w_ref: (ne+3, cpad, cpad) compute_dtype
        # b_ref: (ne+1, 1, cpad) f32; blast_ref: (cpad,1) or (1,cpad) f32
        h = x_ref[...]                                   # (R, F)

        # ---- encoder: Conv1d(k=1) == row matmul; eval-mode BN folded into W/b ----
        for i in range(ne):
            W = w_ref[i]                                 # (cpad, cpad)
            if i == 0:
                W = W[:F, :]                             # first layer eats the unpadded F cols
            a = jnp.dot(h, W, preferred_element_type=jnp.float32) + b_ref[i]
            if i < ne - 1:
                a = jnp.maximum(a, 0.0)                  # ReLU
            h = a.astype(compute_dtype)                  # (R, cpad), real channels [:F]

        Wa = w_ref[ne]                                   # enc2 layer-0, desc half   (real [:F, :2F])
        Wb = w_ref[ne + 1]                               # enc2 layer-0, global half (real [:F, :2F])
        b0 = b_ref[ne]                                   # (1, cpad)
        Wl = w_ref[ne + 2]                               # enc2 final layer
        bl = blast_ref[...]

        # concat([desc, gmax.broadcast]) @ W0  ==  desc @ Wa + gmax @ Wb  (concat eliminated)
        t = jnp.dot(h, Wa, preferred_element_type=jnp.float32)            # (R, cpad) f32
        gmax = jnp.max(h.reshape(Bb, N, cpad), axis=1)                    # (Bb, cpad) batched max
        u = jnp.dot(gmax, Wb, preferred_element_type=jnp.float32) + b0    # (Bb, cpad) one MXU call
        gb = jnp.maximum(t.reshape(Bb, N, cpad) + u[:, None, :], 0.0)     # (Bb, N, cpad) f32

        if ncw_out:
            # N is a multiple of 128: emit NCW (C_out, N) directly, lane-dense stores.
            # Each dot is M=cpad, K=cpad, N-wide -- well sized; Bb is capped small here.
            for bidx in range(Bb):
                g = gb[bidx].astype(compute_dtype)                        # (N, cpad)
                r = jax.lax.dot_general(
                    Wl, g, dimension_numbers=(((1,), (1,)), ((), ())),
                    preferred_element_type=jnp.float32) + bl              # (cpad, N)
                out_ref[bidx] = r[:F, :].astype(out_ref.dtype)            # (F, N)
        else:
            # small / ragged N: one batched final matmul, row-major store (full-dim lanes)
            g = gb.reshape(R, cpad).astype(compute_dtype)
            y = jnp.dot(g, Wl, preferred_element_type=jnp.float32) + bl   # (R, cpad)
            out_ref[...] = y[:, :F].astype(out_ref.dtype)                 # (R, F)

    return kernel


# ----------------------------------------------------------------------------
# Parameter folding / packing (plain JAX glue, runs outside the kernel)
# ----------------------------------------------------------------------------
def fold_bn(layers_raw):
    """Fold eval-mode BatchNorm into the 1x1 conv; return (W^T (Cin,Cout), b (1,Cout))."""
    folded = []
    n = len(layers_raw)
    for i, layer in enumerate(layers_raw):
        W, b = layer["W"], layer["b"]                    # W: (Cout, Cin), b: (Cout,)
        if i < n - 1:
            scale = layer["gamma"] / jnp.sqrt(layer["var"] + BN_EPS)
            shift = layer["beta"] - layer["mean"] * scale
            W = W * scale[:, None]
            b = b * scale + shift
        folded.append((jnp.asarray(W.T), jnp.asarray(b[None, :])))
    return folded


def pack_params(enc_folded, enc2_folded, feature_dim, cpad, ncw_out, compute_dtype):
    """Pack all layers into `cpad`-lane zero-padded stacks.

    W_stack (each (cpad, cpad)): [enc_0..enc_{ne-1}, Wa, Wb, W_last]
    b_stack (each (1, cpad))   : [enc biases ..., enc2_0 bias]
    b_last : (cpad, 1) column bias (NCW path) or (1, cpad) row bias (row-major path).
    Zero padding is exact: padded channels stay 0 through conv/BN-fold/ReLU/max.
    """
    F = feature_dim
    assert len(enc2_folded) == 2, "encoder2 is always MLP([2F, 2F, F])"

    def pad_w(Wt):
        cin, cout = Wt.shape
        assert cin <= cpad and cout <= cpad
        return jnp.zeros((cpad, cpad), jnp.float32).at[:cin, :cout].set(
            Wt.astype(jnp.float32))

    def pad_b_row(b):
        b = jnp.asarray(b).reshape(1, -1).astype(jnp.float32)
        return jnp.zeros((1, cpad), jnp.float32).at[:, :b.shape[1]].set(b)

    w_list, b_rows = [], []
    for Wt, b in enc_folded:
        w_list.append(pad_w(Wt))
        b_rows.append(pad_b_row(b))

    (Wt0, b0), (Wt1, b1) = enc2_folded
    # encoder2 layer 0: concat elimination by splitting input rows of W^T (2F, 2F)
    w_list.append(pad_w(Wt0[:F, :]))     # Wa: multiplies desc channels
    w_list.append(pad_w(Wt0[F:, :]))     # Wb: multiplies the per-batch global max
    b_rows.append(pad_b_row(b0))

    if ncw_out:
        w_list.append(pad_w(jnp.transpose(Wt1)))          # stored (cout, cin)
        b_last = jnp.zeros((cpad, 1), jnp.float32).at[:F, 0].set(
            jnp.asarray(b1).reshape(-1).astype(jnp.float32))
    else:
        w_list.append(pad_w(Wt1))                         # stored (cin, cout)
        b_last = pad_b_row(b1)

    W_stack = jnp.stack(w_list).astype(compute_dtype)     # bf16 weights for the MXU
    b_stack = jnp.stack(b_rows)                           # f32 biases (added post-accumulate)
    return W_stack, b_stack, b_last


def _pick_block_batch(B, N, cpad, max_bb, target_rows=4096, vmem_budget_bytes=24 << 20):
    """Pick Bb (batches per grid step): largest divisor of B such that
       - Bb*N rows fit a VMEM activation budget (safe for v7x's 64 MiB VMEM),
       - the block row count is sublane-aligned (or covers the whole batch),
       - at least 2 grid steps remain when B >= 2 (v7x has 2 TensorCores)."""
    per_row = 24 * cpad                                   # ~6 f32 copies of a cpad-wide row
    rows_cap = max(N, min(target_rows, vmem_budget_bytes // per_row))
    cap = min(max_bb, max(1, rows_cap // max(N, 1)))
    if B >= 2:
        cap = min(cap, B // 2)
    cap = max(cap, 1)

    best = None
    for d in range(1, B + 1):
        if B % d or d > cap:
            continue
        if (d * N) % 8 == 0 or d == B:                    # legal (8,128)-rule block rows
            best = d
    if best is None:
        best = B                                          # whole-batch block is always legal
    return best


# ----------------------------------------------------------------------------
# Wrapper: pallas_call
# ----------------------------------------------------------------------------
def descriptor_global_encoder(kpts, enc_folded, enc2_folded, *,
                              compute_dtype=jnp.bfloat16):
    """kpts: (B, N, F) float32. Returns (B, F, N) (NCW) like the PyTorch module."""
    B, N, F = kpts.shape
    ne = len(enc_folded)

    # channel padding: next multiple of 128 of the widest channel axis (handles F >= 128)
    widths = [F, 2 * F]
    for Wt, _ in enc_folded:
        widths += [int(Wt.shape[0]), int(Wt.shape[1])]
    cpad = ((max(widths) + 127) // 128) * 128

    ncw_out = (N % 128 == 0)                 # lane-dense NCW stores only when N fills lanes
    max_bb = 8 if ncw_out else (1 << 30)     # NCW path unrolls a short per-batch final matmul
    Bb = _pick_block_batch(B, N, cpad, max_bb)

    W_stack, b_stack, b_last = pack_params(
        enc_folded, enc2_folded, F, cpad, ncw_out, compute_dtype)

    x2 = kpts.astype(compute_dtype).reshape(B * N, F)     # bf16 rows, F on lanes
    kernel = _make_kernel(ne, F, N, Bb, cpad, ncw_out, compute_dtype)

    if ncw_out:
        out_shape = jax.ShapeDtypeStruct((B, F, N), kpts.dtype)
        out_spec = pl.BlockSpec((Bb, F, N), lambda bt: (bt, 0, 0))
    else:
        out_shape = jax.ShapeDtypeStruct((B * N, F), kpts.dtype)
        out_spec = pl.BlockSpec((Bb * N, F), lambda bt: (bt, 0))

    out = pl.pallas_call(
        kernel,
        out_shape=out_shape,
        grid=(B // Bb,),
        in_specs=[
            pl.BlockSpec((Bb * N, F), lambda bt: (bt, 0)),              # batch-tile of rows
            pl.BlockSpec(tuple(W_stack.shape), lambda bt: (0, 0, 0)),   # packed weights, resident
            pl.BlockSpec(tuple(b_stack.shape), lambda bt: (0, 0, 0)),   # packed biases, resident
            pl.BlockSpec(tuple(b_last.shape), lambda bt: (0, 0)),       # final-layer bias
        ],
        out_specs=out_spec,
        compiler_params=pltpu.CompilerParams(
            dimension_semantics=("parallel",),
            vmem_limit_bytes=32 * 1024 * 1024,   # tiles are sized to stay well under this on v5e/v6e/v7x
        ),
    )(x2, W_stack, b_stack, b_last)

    if ncw_out:
        return out                                         # already (B, F, N)
    # small-N path: kernel emitted row-major (B*N, F); tiny XLA transpose restores NCW
    return jnp.transpose(out.reshape(B, N, F), (0, 2, 1))


# ----------------------------------------------------------------------------
# Deterministic parameter init (mirrors module __init__ shapes)
# ----------------------------------------------------------------------------
def init_params(key, feature_dim, layers):
    def init_mlp(key, channels, zero_last_bias):
        raw = []
        n = len(channels)
        for i in range(1, n):
            cin, cout = channels[i - 1], channels[i]
            key, kw, kb, kg, kbt = jax.random.split(key, 5)
            bound = 1.0 / (cin ** 0.5)
            W = jax.random.uniform(kw, (cout, cin), jnp.float32, -bound, bound)
            b = jax.random.uniform(kb, (cout,), jnp.float32, -bound, bound)
            if i == n - 1 and zero_last_bias:
                b = jnp.zeros((cout,), jnp.float32)        # nn.init.constant_(bias, 0.0)
            layer = {"W": W, "b": b}
            if i < n - 1:                                  # BN params (inference-mode stats)
                layer["gamma"] = 1.0 + 0.1 * jax.random.uniform(kg, (cout,), jnp.float32, -1.0, 1.0)
                layer["beta"] = 0.1 * jax.random.uniform(kbt, (cout,), jnp.float32, -1.0, 1.0)
                layer["mean"] = jnp.zeros((cout,), jnp.float32)
                layer["var"] = jnp.ones((cout,), jnp.float32)
            raw.append(layer)
        return key, raw

    enc_channels = [feature_dim] + list(layers) + [feature_dim]
    enc2_channels = [feature_dim * 2, feature_dim * 2, feature_dim]
    key, enc_raw = init_mlp(key, enc_channels, True)
    key, enc2_raw = init_mlp(key, enc2_channels, True)
    return enc_raw, enc2_raw


# ----------------------------------------------------------------------------
# Pure-JAX reference (mirrors the PyTorch forward, NCW layout) for verification
# ----------------------------------------------------------------------------
def ref_forward(kpts, enc_raw, enc2_raw):
    def apply_mlp(x, layers_raw):                          # x: (B, C, N)
        n = len(layers_raw)
        for i, layer in enumerate(layers_raw):
            W, b = layer["W"], layer["b"]
            x = jnp.einsum("oc,bcn->bon", W, x) + b[None, :, None]
            if i < n - 1:
                m, v = layer["mean"], layer["var"]
                g, bt = layer["gamma"], layer["beta"]
                x = (x - m[None, :, None]) / jnp.sqrt(v[None, :, None] + BN_EPS)
                x = x * g[None, :, None] + bt[None, :, None]
                x = jnp.maximum(x, 0.0)
        return x

    x = jnp.swapaxes(kpts, 1, 2)                           # (B, F, N)
    desc = apply_mlp(x, enc_raw)                           # (B, F, N)
    gloab = jnp.max(desc, axis=2, keepdims=True)           # (B, F, 1)
    gloab = jnp.broadcast_to(gloab, desc.shape)            # repeat over N
    desc = jnp.concatenate([desc, gloab], axis=1)          # (B, 2F, N)
    desc = apply_mlp(desc, enc2_raw)                       # (B, F, N)
    return desc


if __name__ == "__main__":
    key = jax.random.PRNGKey(0)
    B, N, F = 2, 16, 32
    layers = [32, 64]

    k_x, k_p = jax.random.split(key)
    kpts = jax.random.normal(k_x, (B, N, F), jnp.float32)

    enc_raw, enc2_raw = init_params(k_p, F, layers)
    enc_folded = fold_bn(enc_raw)
    enc2_folded = fold_bn(enc2_raw)

    out = descriptor_global_encoder(kpts, enc_folded, enc2_folded)
    out = jax.block_until_ready(out)

    assert out.shape == (B, F, N), out.shape
    ref = ref_forward(kpts, enc_raw, enc2_raw)
    # bf16 MXU path: tolerance sized for bfloat16 input rounding (f32 accumulation)
    np.testing.assert_allclose(np.asarray(out), np.asarray(ref), rtol=5e-2, atol=5e-2)

    print("KERNEL_OK")
</pallas_src>

<mosaic_0001>
module attributes {stable_mosaic.version = 11 : i64} {
  func.func @kernel(%arg0: i32, %arg1: memref<16x32xbf16, #tpu.memory_space<vmem>>, %arg2: memref<6x128x128xbf16, #tpu.memory_space<vmem>>, %arg3: memref<4x1x128xf32, #tpu.memory_space<vmem>>, %arg4: memref<1x128xf32, #tpu.memory_space<vmem>>, %arg5: memref<16x32xf32, #tpu.memory_space<vmem>>) attributes {dimension_semantics = [#tpu.dimension_semantics<parallel>], iteration_bounds = array<i64: 2>, scalar_prefetch = 0 : i64, scratch_operands = 0 : i64, tpu.core_type = #tpu.core_type<tc>, window_params = [{transform_indices = @transform_0, window_bounds = array<i64: 16, 32>}, {pipeline_mode = #tpu.pipeline_mode<synchronous>, transform_indices = @transform_1, window_bounds = array<i64: 6, 128, 128>}, {pipeline_mode = #tpu.pipeline_mode<synchronous>, transform_indices = @transform_2, window_bounds = array<i64: 4, 1, 128>}, {pipeline_mode = #tpu.pipeline_mode<synchronous>, transform_indices = @transform_3, window_bounds = array<i64: 1, 128>}, {transform_indices = @transform_4, window_bounds = array<i64: 16, 32>}]} {
    %c0 = arith.constant 0 : index
    %c0_0 = arith.constant 0 : index
    %0 = vector.load %arg1[%c0, %c0_0] : memref<16x32xbf16, #tpu.memory_space<vmem>>, vector<16x32xbf16>
    %c0_1 = arith.constant 0 : index
    %c0_2 = arith.constant 0 : index
    %c0_3 = arith.constant 0 : index
    %1 = vector.load %arg2[%c0_1, %c0_2, %c0_3] : memref<6x128x128xbf16, #tpu.memory_space<vmem>>, vector<1x128x128xbf16>
    %2 = vector.shape_cast %1 : vector<1x128x128xbf16> to vector<128x128xbf16>
    %3 = vector.extract_strided_slice %2 {offsets = [0, 0], sizes = [32, 128], strides = [1, 1]} : vector<128x128xbf16> to vector<32x128xbf16>
    %cst = arith.constant dense<0.000000e+00> : vector<16x128xf32>
    %4 = tpu.matmul %0, %3, %cst {dimension_numbers = #tpu.dot_dimension_numbers<[1], [0], [0], [1], [0, 0, 1, 1], [], []>} : vector<16x32xbf16>, vector<32x128xbf16>, vector<16x128xf32> -> vector<16x128xf32>
    %c0_4 = arith.constant 0 : index
    %c0_5 = arith.constant 0 : index
    %c0_6 = arith.constant 0 : index
    %5 = vector.load %arg3[%c0_4, %c0_5, %c0_6] : memref<4x1x128xf32, #tpu.memory_space<vmem>>, vector<1x1x128xf32>
    %6 = vector.shape_cast %5 : vector<1x1x128xf32> to vector<1x128xf32>
    %7 = vector.broadcast %6 : vector<1x128xf32> to vector<16x128xf32>
    %8 = arith.addf %4, %7 : vector<16x128xf32>
    %cst_7 = arith.constant 0.000000e+00 : f32
    %9 = vector.broadcast %cst_7 : f32 to vector<16x128xf32>
    %10 = arith.maximumf %8, %9 : vector<16x128xf32>
    %11 = arith.truncf %10 : vector<16x128xf32> to vector<16x128xbf16>
    %c1 = arith.constant 1 : index
    %c0_8 = arith.constant 0 : index
    %c0_9 = arith.constant 0 : index
    %12 = vector.load %arg2[%c1, %c0_8, %c0_9] : memref<6x128x128xbf16, #tpu.memory_space<vmem>>, vector<1x128x128xbf16>
    %13 = vector.shape_cast %12 : vector<1x128x128xbf16> to vector<128x128xbf16>
    %cst_10 = arith.constant dense<0.000000e+00> : vector<16x128xf32>
    %14 = tpu.matmul %11, %13, %cst_10 {dimension_numbers = #tpu.dot_dimension_numbers<[1], [0], [0], [1], [0, 0, 1, 1], [], []>} : vector<16x128xbf16>, vector<128x128xbf16>, vector<16x128xf32> -> vector<16x128xf32>
    %c1_11 = arith.constant 1 : index
    %c0_12 = arith.constant 0 : index
    %c0_13 = arith.constant 0 : index
    %15 = vector.load %arg3[%c1_11, %c0_12, %c0_13] : memref<4x1x128xf32, #tpu.memory_space<vmem>>, vector<1x1x128xf32>
    %16 = vector.shape_cast %15 : vector<1x1x128xf32> to vector<1x128xf32>
    %17 = vector.broadcast %16 : vector<1x128xf32> to vector<16x128xf32>
    %18 = arith.addf %14, %17 : vector<16x128xf32>
    %cst_14 = arith.constant 0.000000e+00 : f32
    %19 = vector.broadcast %cst_14 : f32 to vector<16x128xf32>
    %20 = arith.maximumf %18, %19 : vector<16x128xf32>
    %21 = arith.truncf %20 : vector<16x128xf32> to vector<16x128xbf16>
    %c2 = arith.constant 2 : index
    %c0_15 = arith.constant 0 : index
    %c0_16 = arith.constant 0 : index
    %22 = vector.load %arg2[%c2, %c0_15, %c0_16] : memref<6x128x128xbf16, #tpu.memory_space<vmem>>, vector<1x128x128xbf16>
    %23 = vector.shape_cast %22 : vector<1x128x128xbf16> to vector<128x128xbf16>
    %cst_17 = arith.constant dense<0.000000e+00> : vector<16x128xf32>
    %24 = tpu.matmul %21, %23, %cst_17 {dimension_numbers = #tpu.dot_dimension_numbers<[1], [0], [0], [1], [0, 0, 1, 1], [], []>} : vector<16x128xbf16>, vector<128x128xbf16>, vector<16x128xf32> -> vector<16x128xf32>
    %c2_18 = arith.constant 2 : index
    %c0_19 = arith.constant 0 : index
    %c0_20 = arith.constant 0 : index
    %25 = vector.load %arg3[%c2_18, %c0_19, %c0_20] : memref<4x1x128xf32, #tpu.memory_space<vmem>>, vector<1x1x128xf32>
    %26 = vector.shape_cast %25 : vector<1x1x128xf32> to vector<1x128xf32>
    %27 = vector.broadcast %26 : vector<1x128xf32> to vector<16x128xf32>
    %28 = arith.addf %24, %27 : vector<16x128xf32>
    %29 = arith.truncf %28 : vector<16x128xf32> to vector<16x128xbf16>
    %c3 = arith.constant 3 : index
    %c0_21 = arith.constant 0 : index
    %c0_22 = arith.constant 0 : index
    %30 = vector.load %arg2[%c3, %c0_21, %c0_22] : memref<6x128x128xbf16, #tpu.memory_space<vmem>>, vector<1x128x128xbf16>
    %31 = vector.shape_cast %30 : vector<1x128x128xbf16> to vector<128x128xbf16>
    %c4 = arith.constant 4 : index
    %c0_23 = arith.constant 0 : index
    %c0_24 = arith.constant 0 : index
    %32 = vector.load %arg2[%c4, %c0_23, %c0_24] : memref<6x128x128xbf16, #tpu.memory_space<vmem>>, vector<1x128x128xbf16>
    %33 = vector.shape_cast %32 : vector<1x128x128xbf16> to vector<128x128xbf16>
    %c3_25 = arith.constant 3 : index
    %c0_26 = arith.constant 0 : index
    %c0_27 = arith.constant 0 : index
    %34 = vector.load %arg3[%c3_25, %c0_26, %c0_27] : memref<4x1x128xf32, #tpu.memory_space<vmem>>, vector<1x1x128xf32>
    %35 = vector.shape_cast %34 : vector<1x1x128xf32> to vector<1x128xf32>
    %c5 = arith.constant 5 : index
    %c0_28 = arith.constant 0 : index
    %c0_29 = arith.constant 0 : index
    %36 = vector.load %arg2[%c5, %c0_28, %c0_29] : memref<6x128x128xbf16, #tpu.memory_space<vmem>>, vector<1x128x128xbf16>
    %37 = vector.shape_cast %36 : vector<1x128x128xbf16> to vector<128x128xbf16>
    %c0_30 = arith.constant 0 : index
    %c0_31 = arith.constant 0 : index
    %38 = vector.load %arg4[%c0_30, %c0_31] : memref<1x128xf32, #tpu.memory_space<vmem>>, vector<1x128xf32>
    %cst_32 = arith.constant dense<0.000000e+00> : vector<16x128xf32>
    %39 = tpu.matmul %29, %31, %cst_32 {dimension_numbers = #tpu.dot_dimension_numbers<[1], [0], [0], [1], [0, 0, 1, 1], [], []>} : vector<16x128xbf16>, vector<128x128xbf16>, vector<16x128xf32> -> vector<16x128xf32>
    %40 = vector.shape_cast %29 : vector<16x128xbf16> to vector<1x16x128xbf16>
    %cst_33 = arith.constant dense<0xFF80> : vector<1x128xbf16>
    %41 = vector.multi_reduction <maximumf>, %40, %cst_33 [1] : vector<1x16x128xbf16> to vector<1x128xbf16>
    %cst_34 = arith.constant dense<0.000000e+00> : vector<1x128xf32>
    %42 = tpu.matmul %41, %33, %cst_34 {dimension_numbers = #tpu.dot_dimension_numbers<[1], [0], [0], [1], [0, 0, 1, 1], [], []>} : vector<1x128xbf16>, vector<128x128xbf16>, vector<1x128xf32> -> vector<1x128xf32>
    %43 = arith.addf %42, %35 : vector<1x128xf32>
    %44 = vector.shape_cast %39 : vector<16x128xf32> to vector<1x16x128xf32>
    %45 = vector.shape_cast %43 : vector<1x128xf32> to vector<1x1x128xf32>
    %46 = vector.broadcast %45 : vector<1x1x128xf32> to vector<1x16x128xf32>
    %47 = arith.addf %44, %46 : vector<1x16x128xf32>
    %cst_35 = arith.constant 0.000000e+00 : f32
    %48 = vector.broadcast %cst_35 : f32 to vector<1x16x128xf32>
    %49 = arith.maximumf %47, %48 : vector<1x16x128xf32>
    %50 = vector.shape_cast %49 : vector<1x16x128xf32> to vector<16x128xf32>
    %51 = arith.truncf %50 : vector<16x128xf32> to vector<16x128xbf16>
    %cst_36 = arith.constant dense<0.000000e+00> : vector<16x128xf32>
    %52 = tpu.matmul %51, %37, %cst_36 {dimension_numbers = #tpu.dot_dimension_numbers<[1], [0], [0], [1], [0, 0, 1, 1], [], []>} : vector<16x128xbf16>, vector<128x128xbf16>, vector<16x128xf32> -> vector<16x128xf32>
    %53 = vector.broadcast %38 : vector<1x128xf32> to vector<16x128xf32>
    %54 = arith.addf %52, %53 : vector<16x128xf32>
    %55 = vector.extract_strided_slice %54 {offsets = [0, 0], sizes = [16, 32], strides = [1, 1]} : vector<16x128xf32> to vector<16x32xf32>
    %c0_37 = arith.constant 0 : index
    %c0_38 = arith.constant 0 : index
    %56 = vector.load %arg5[%c0_37, %c0_38] : memref<16x32xf32, #tpu.memory_space<vmem>>, vector<16x32xf32>
    tpu.vector_store %arg5[%c0_37, %c0_38], %55 {strides = array<i32>} : memref<16x32xf32, #tpu.memory_space<vmem>>, vector<16x32xf32>,
    return
  }
  func.func @transform_0(%arg0: i32) -> (i32, i32) {
    %c0_i32 = arith.constant 0 : i32
    %c0_i32_0 = arith.constant 0 : i32
    return %arg0, %c0_i32 : i32, i32
  }
  func.func @transform_1(%arg0: i32) -> (i32, i32, i32) {
    %c0_i32 = arith.constant 0 : i32
    %c0_i32_0 = arith.constant 0 : i32
    %c0_i32_1 = arith.constant 0 : i32
    %c0_i32_2 = arith.constant 0 : i32
    return %c0_i32, %c0_i32_0, %c0_i32_1 : i32, i32, i32
  }
  func.func @transform_2(%arg0: i32) -> (i32, i32, i32) {
    %c0_i32 = arith.constant 0 : i32
    %c0_i32_0 = arith.constant 0 : i32
    %c0_i32_1 = arith.constant 0 : i32
    %c0_i32_2 = arith.constant 0 : i32
    return %c0_i32, %c0_i32_0, %c0_i32_1 : i32, i32, i32
  }
  func.func @transform_3(%arg0: i32) -> (i32, i32) {
    %c0_i32 = arith.constant 0 : i32
    %c0_i32_0 = arith.constant 0 : i32
    %c0_i32_1 = arith.constant 0 : i32
    return %c0_i32, %c0_i32_0 : i32, i32
  }
  func.func @transform_4(%arg0: i32) -> (i32, i32) {
    %c0_i32 = arith.constant 0 : i32
    %c0_i32_0 = arith.constant 0 : i32
    return %arg0, %c0_i32 : i32, i32
  }
}

</mosaic_0001>

<bundles_post_ra>
// kernel: tpu_custom_call.1
= control target key start
LH: loop header
LB: loop body
LE: loop exit
PB: predicated region body
PF: predicated region fallthrough
CT: control target
= control target key end

     0   :  { %9 = vsyncpa [#allocation3], 0  ;;  %s1763_s0 = inlined_call_operand.hbm [shape: bf16[32,32], index: 0, kind: input, shape index: {}]   ;;  %s1764_s1 = inlined_call_operand.hbm [shape: bf16[6,128,128], index: 1, kind: input, shape index: {}]   ;;  %s1765_s2 = inlined_call_operand.vmem [shape: f32[4,1,128], index: 2, kind: input, shape index: {}]   ;;  %s1766_s3 = inlined_call_operand.vmem [shape: f32[1,128], index: 3, kind: input, shape index: {}]   ;;  %s1767_s4 = inlined_call_operand.hbm [shape: f32[32,32], index: 4, kind: output, shape index: {}]  }
   0x1   :  { %11 = vsyncpa [#allocation3 + $0x1], 0 }
   0x2   :  { %12 = vsyncpa [#allocation6], 0 }
   0x3   :  { %13 = vsyncpa [#allocation4], 0 }
   0x4   :  { %15 = vsyncpa [#allocation4 + $0x1], 0  ;;  %s1483_s15 = smov 0   ;;  %s1485_s16 = smov 0  }
   0x5   :  { %s1487_s17 = smov 0   ;;  %s1489_s18 = smov 0  }
   0x6 LB: > { %s1504_s19 = sadd.s32 4294967295, %s1447_s18   ;;  %s988_s20 = sadd.s32 4294967294, %s1447_s18   ;;  %s1447_s18 = sphi %s1489_s18, %s1787_s18   ;;  %s1443_s17 = sphi %s1487_s17, %s1786_s17   ;;  %s1439_s16 = sphi %s1485_s16, %s1785_s16   ;;  %s1435_s15 = sphi %s1483_s15, %s1784_s15  }
   0x7   : > { %p41_p0 = scmp.ne.s32.totalorder %s1439_s16, %s1435_s15  ;;  %p1768_p1 = scmp.eq.s32.totalorder %s1504_s19, 0 }
   0x8   : > { %p134_p3 = scmp.eq.s32.totalorder %s988_s20, 1  ;;  %p989_p5 = scmp.ge.s32.totalorder %s1447_s18, 1 }
   0x9   : > { %p1513_p4 = por %p1768_p1, %p41_p0  ;;  %p141_p7 = scmp.lt.s32.totalorder %s1447_s18, 3 }
   0xa   : > { %p1518_p6 = por %p134_p3, %p41_p0  ;;  %s1449_s24 = smov [#allocation5]  }
   0xb   : > { %s1771_s21 = scalar_select %p1513_p4, 1, 0 }
   0xc   : > { %s1772_s22 = scalar_select %p1518_p6, 1, 0 }
   0xd   : > { %p1523_p8 = pnand %p989_p5, %p141_p7  ;;  %s153_s25 = sshll.u32 %s1449_s24, 4  ;;  %s1527_s25 = int_to_ptr.vmem [resolvable:$true] %s153_s25 }
   0xe   : > { %s1539_s27 = sadd.s32 1, %s1447_s18   ;;  %s28_s28 = sadd.s32 1, %s1443_s17 }
   0xf   : > { %s1773_s23 = scalar_select %p1523_p8, 1, 0 }
  0x10   : > { %p1221_p9 = pneg %p1523_p8  ;;  %s25_s29 = ssub.s32 %s1447_s18, %s1539_s27 }
  0x11   : > { %s1319_s6 = scalar_lea.hbm %s1764_s1, 6144 }
  0x12   : > { %p1534_p11 = pnand %p1221_p9, %p1768_p1  ;;  %p1320_p12 = scmp.ne.s32.totalorder %s1764_s1, %s1319_s6 }
  0x13   : > { %p1326_p5 = scmp.lt.u32.totalorder %s1319_s6, %s1764_s1 }
  0x14   : > { %p1321_p13 = pneg %p1534_p11 }
  0x16   : > { %p1322_p0 = pnand %p1321_p13, %p1320_p12 }
  0x18   : > { %p1323_p3 = pneg %p1322_p0 }
  0x1a   : > { %p1328_p7 = pnand %p1326_p5, %p1323_p3 }
  0x1c   : > { %1331 = shalt.err (!%p1328_p7)
}
  0x1d   : > { %s1332_s11 = scalar_lea.vmem %s1527_s25, 6144  ;;  %p1340_p2 = scmp.lt.s32.totalorder %s1527_s25, %s1527_s25 }
  0x1e   : > { %p1333_p9 = scmp.ne.s32.totalorder %s1527_s25, %s1332_s11  ;;  %p1341_p6 = scmp.lt.s32.totalorder %s1332_s11, %s1332_s11 }
  0x20   : > { %p1335_p10 = pnand %p1333_p9, %p1321_p13  ;;  %p1342_p4 = por %p1341_p6, %p1340_p2 }
  0x22   : > { %p1336_p1 = pneg %p1335_p10 }
  0x24   : > { %p1343_p8 = pnand %p1342_p4, %p1336_p1 }
  0x26   : > { %1346 = shalt.err (!%p1343_p8)
}
  0x27   : > { %s1450_s12 = smov 64   ;;  %s1451_s13 = smov 4  }
  0x28   : > { %1224 = dma.hbm_to_vmem [thread:$0]  (!%p1534_p11), %s1764_s1, 6144, %s1527_s25, [#allocation6], %s1450_s12, %s1450_s12, %s1451_s13  }
  0x29   : > { %p26_p1 = scmp.eq.s32.totalorder %s25_s29, 0  ;;  %p35_p2 = scmp.ne.s32.totalorder %s1443_s17, %s1439_s16 }
  0x2a   : > { %p36_p4 = scmp.eq.s32.totalorder %s1447_s18, 0  ;;  %p1234_p6 = scmp.lt.s32.totalorder %s1447_s18, 2 }
  0x2b   : > { %s1573_s24 = scalar_select %p26_p1, %s1443_s17, %s28_s28  }
  0x2c   : > { %p37_p8 = por %p36_p4, %p35_p2  ;;  %p1775_p10 = scmp.eq.s32.totalorder %s1504_s19, 1 }
  0x2d   : > { %s173_s26 = sand.u32 1, %s1443_s17   ;;  %s1055_s5 = sshll.u32 %s1447_s18, 7 }
  0x2e   : > { %p1577_p12 = por %p1775_p10, %p35_p2  ;;  %s992_s6 = sshll.u32 %s173_s26, 3 }
  0x2f   : > { %s1586_s9 = scalar_lea.hbm %s1763_s0, %s1055_s5  ;;  %s177_s25 = scalar_lea.vmem [#allocation2], %s992_s6 }
  0x30   : > { %s184_s28 = sshll.u32 %s177_s25, 4  ;;  %p1588_p11 = pnand %p1234_p6, %p37_p8  ;;  %s1592_s28 = int_to_ptr.vmem [resolvable:$true] %s184_s28 }
  0x31   : > { %s1594_s10 = scalar_lea.sflag [#allocation3], %s173_s26  ;;  %s1347_s11 = scalar_lea.hbm %s1586_s9, 128 }
  0x32   : > { %p1348_p13 = scmp.ne.s32.totalorder %s1586_s9, %s1347_s11  ;;  %p1349_p0 = pneg %p1588_p11 }
  0x33   : > { %s1352_s5 = scalar_lea.hbm %s1763_s0, 256  ;;  %p1353_p7 = scmp.lt.u32.totalorder %s1586_s9, %s1763_s0 }
  0x34   : > { %p1350_p3 = pnand %p1349_p0, %p1348_p13  ;;  %p1354_p9 = scmp.lt.u32.totalorder %s1352_s5, %s1347_s11 }
  0x35   : > { %p1356_p2 = scmp.lt.u32.totalorder %s1347_s11, %s1586_s9 }
  0x36   : > { %p1351_p5 = pneg %p1350_p3  ;;  %p1355_p1 = por %p1354_p9, %p1353_p7 }
  0x38   : > { %p1357_p4 = por %p1356_p2, %p1355_p1 }
  0x3a   : > { %p1358_p6 = pnand %p1357_p4, %p1351_p5 }
  0x3c   : > { %1361 = shalt.err (!%p1358_p6)
}
  0x3d   : > { %s1362_s26 = scalar_lea.vmem %s1592_s28, 128  ;;  %s1452_s8 = smov [#allocation2]  }
  0x3e   : > { %p1363_p8 = scmp.ne.s32.totalorder %s1592_s28, %s1362_s26  ;;  %s1367_s25 = sshll.u32 %s1452_s8, 4  ;;  %s1368_s25 = int_to_ptr.vmem [resolvable:$false] %s1367_s25 }
  0x3f   : > { %s1369_s14 = scalar_lea.vmem %s1368_s25, 256  ;;  %p1370_p3 = scmp.lt.s32.totalorder %s1592_s28, %s1368_s25 }
  0x40   : > { %p1365_p10 = pnand %p1363_p8, %p1349_p0  ;;  %p1371_p7 = scmp.lt.s32.totalorder %s1369_s14, %s1362_s26 }
  0x42   : > { %p1366_p13 = pneg %p1365_p10  ;;  %p1372_p9 = por %p1371_p7, %p1370_p3 }
  0x44   : > { %p1373_p1 = pnand %p1372_p9, %p1366_p13 }
  0x46   : > { %1376 = shalt.err (!%p1373_p1)
}
  0x47   : > { %1228 = dma.hbm_to_vmem [thread:$0]  (!%p1588_p11), %s1586_s9, 128, %s1592_s28, %s1594_s10, %s1450_s12, %s1450_s12, %s1451_s13  }
  0x48   : > { %p1778_p0 = scmp.ne.s32.totalorder %s1773_s23, 0 }
  0x49   : > { %s1628_s11 = sand.u32 (!%p1778_p0), 1, %s1439_s16   ;;  %p1779_p5 = scmp.ne.s32.totalorder (!%p1778_p0), %s1771_s21, 0 }
  0x4a   : > { %196 = sbr.rel (%p1778_p0) target bundleno = 1224 (0x4c8), region = 36  ;;  %s996_s20 = sshll.u32 (!%p1778_p0), %s1628_s11, 3 }
  0x4b   : > { %s199_s5 = scalar_lea.sflag (!%p1778_p0), [#allocation3], %s1628_s11  ;;  %s202_s6 = scalar_lea.vmem (!%p1778_p0), [#allocation2], %s996_s20 }
  0x51   : > { %1422 = dma.done.wait (%p1779_p5), %s199_s5, 128  }
  0x52   : > { %1424 = vsyncadd (%p1779_p5), %s199_s5, 4294967168  ;;  %p1780_p2 = scmp.eq.s32.totalorder %s1504_s19, 0 }
  0x54   : > { %1426 = dma.done.wait (%p1780_p2), [#allocation6], 6144   ;;  %p1781_p11 = pmov %p1780_p2 }
  0x55   : > { %v1453_v0 = vmov 0.0   ;;  %vm1454_vm0 = vmmov 0   ;;  %v1276_v1 = vld [vmem:[#allocation5] sm:$0xff]   ;;  %v1277_v2 = vld [vmem:[#allocation5 + $0x8] sm:$0xff]   ;;  %v1278_v4 = vld [vmem:[%s202_s6] sm:$0xff]   ;;  %vm264_vm1 = vcmask 261120  }
  0x56   : > { %1428 = vsyncadd (%p1781_p11), [#allocation6], 4294961152  ;;  %1105 = vmatprep.subr.bf16.mxu0 %v1453_v0  ;;  %1109 = vmatprep.mubr.msk.bf16.mxu0 %vm1454_vm0, %v1453_v0  ;;  %v1279_v3 = vld [vmem:[#allocation5 + $0x40] sm:$0xff]   ;;  %v1280_v5 = vld [vmem:[#allocation5 + $0x48] sm:$0xff]   ;;  %s998_s7 = sshll.u32 %s1628_s11, 4  ;;  %s1056_s20 = sshll.u32 %s1504_s19, 8 }
  0x57   : > { %1113 = vmatprep.subr.bf16.mxu1 %v1453_v0  ;;  %1129 = vmatprep.mubr.msk.bf16.mxu1 %vm1454_vm0, %v1453_v0  ;;  %v1281_v6 = vld [vmem:[#allocation5 + $0x50] sm:$0xff]   ;;  %v1282_v7 = vld [vmem:[#allocation5 + $0x58] sm:$0xff]   ;;  %v1283_v8 = vld [vmem:[#allocation5 + $0x60] sm:$0xff]   ;;  %s230_s25 = scalar_lea.vmem [#allocation7], %s998_s7  ;;  %s1717_s21 = scalar_lea.hbm %s1767_s4, %s1056_s20 }
  0x58   : > { %1106 = vmatpush3.bf16.msra.mxu0 %v1276_v1  ;;  %1114 = vmatpush3.bf16.msra.mxu1 %v1279_v3  ;;  %v1284_v9 = vld [vmem:[#allocation5 + $0x68] sm:$0xff]   ;;  %v1285_v10 = vld [vmem:[#allocation5 + $0x70] sm:$0xff]   ;;  %v1286_v11 = vld [vmem:[#allocation5 + $0x78] sm:$0xff]   ;;  %s905_s14 = sshll.u32 %s230_s25, 4  ;;  %s892_s19 = scalar_lea.sflag [#allocation4], %s1628_s11  ;;  %s1712_s14 = int_to_ptr.vmem [resolvable:$true] %s905_s14 }
  0x59   : > { %1107 = vmatprep.subr.bf16.mxu0 %v1453_v0  ;;  %1115 = vmatprep.subr.bf16.mxu1 %v1453_v0  ;;  %v1287_v12 = vld [vmem:[#allocation5 + $0x80] sm:$0xff]   ;;  %v1288_v13 = vld [vmem:[#allocation5 + $0x88] sm:$0xff]   ;;  %v1289_v14 = vld [vmem:[#allocation5 + $0x90] sm:$0xff]   ;;  %s1377_s23 = scalar_lea.vmem %s1712_s14, 256  ;;  %s1455_s12 = smov [#allocation7]  }
  0x5a   : > { %v1290_v15 = vld [vmem:[#allocation5 + $0x98] sm:$0xff]   ;;  %v1291_v16 = vld [vmem:[#allocation5 + $0xa0] sm:$0xff]   ;;  %v1292_v17 = vld [vmem:[#allocation5 + $0xa8] sm:$0xff]   ;;  %p1378_p4 = scmp.ne.s32.totalorder %s1712_s14, %s1377_s23  ;;  %s1381_s13 = sshll.u32 %s1455_s12, 4  ;;  %s1382_s13 = int_to_ptr.vmem [resolvable:$false] %s1381_s13 }
  0x5b   : > { %v999_v18 = vld [vmem:[%s1765_s2] ss:$0 sm:$0xff]  ;;  %v1294_v29 = vld [vmem:[#allocation5 + $0xb8] sm:$0xff]   ;;  %v1295_v30 = vld [vmem:[#allocation5 + $0xc0] sm:$0xff]   ;;  %s1383_s9 = scalar_lea.vmem %s1382_s13, 512  ;;  %p1384_p10 = scmp.lt.s32.totalorder %s1712_s14, %s1382_s13 }
  0x5c   : > { %1108 = vmatpush3.bf16.msra.mxu0 %v1277_v2  ;;  %1116 = vmatpush3.bf16.msra.mxu1 %v1280_v5  ;;  %v1293_v28 = vld [vmem:[#allocation5 + $0xb0] sm:$0xff]   ;;  %v1296_v31 = vld [vmem:[#allocation5 + $0xc8] sm:$0xff]   ;;  %v1298_v33 = vld [vmem:[#allocation5 + $0xd8] sm:$0xff]   ;;  %p1379_p6 = pnand %p1378_p4, %p1577_p12  ;;  %p1385_p13 = scmp.lt.s32.totalorder %s1383_s9, %s1377_s23 }
  0x5d   : > { %1133 = vmatprep.subr.bf16.mxu0 %v1453_v0  ;;  %1117 = vmatprep.subr.bf16.mxu1 %v1453_v0  ;;  %v1297_v32 = vld [vmem:[#allocation5 + $0xd0] sm:$0xff]   ;;  %v1299_v34 = vld [vmem:[#allocation5 + $0xe0] sm:$0xff]   ;;  %v1301_v35 = vld [vmem:[#allocation5 + $0xe8] sm:$0xff]  }
  0x5e   : > { %v1005_v36 = vld [vmem:[%s1765_s2 + $0x1] ss:$0 sm:$0xff]  ;;  %v1300_v45 = vld [vmem:[#allocation5 + $0x100] sm:$0xff]   ;;  %v1302_v47 = vld [vmem:[#allocation5 + $0x108] sm:$0xff]   ;;  %p1380_p8 = pneg %p1379_p6  ;;  %p1386_p3 = por %p1385_p13, %p1384_p10 }
  0x5f   : > { %1110 = vmatmul.mubr.msk.bf16.vlgmr.msra.gmra.mrb[0].mxu0 %vm264_vm1, %v1278_v4  ;;  %v1303_v48 = vld [vmem:[#allocation5 + $0xf0] sm:$0xff]   ;;  %v1305_v50 = vld [vmem:[#allocation5 + $0xf8] sm:$0xff]   ;;  %v1307_v52 = vld [vmem:[#allocation5 + $0x120] sm:$0xff]  }
  0x60   : > { %1149 = vmatprep.mubr.msk.bf16.mxu0 %vm1454_vm0, %v1453_v0  ;;  %1118 = vmatpush3.bf16.msra.mxu1 %v1281_v6  ;;  %v1304_v49 = vld [vmem:[#allocation5 + $0x110] sm:$0xff]   ;;  %v1306_v51 = vld [vmem:[#allocation5 + $0x118] sm:$0xff]   ;;  %v1308_v53 = vld [vmem:[#allocation5 + $0x128] sm:$0xff]   ;;  %p1387_p7 = pnand %p1386_p3, %p1380_p8 }
  0x61   : > { %1119 = vmatprep.subr.bf16.mxu1 %v1453_v0  ;;  %1134 = vmatpush3.bf16.msra.mxu0 %v1287_v12  ;;  %v1309_v54 = vld [vmem:[#allocation5 + $0x130] sm:$0xff]   ;;  %v1310_v55 = vld [vmem:[#allocation5 + $0x138] sm:$0xff]   ;;  %v1311_v63 = vld [vmem:[#allocation5 + $0x140] sm:$0xff]  }
  0x62   : > { %1135 = vmatprep.subr.bf16.mxu0 %v1453_v0  ;;  %v1015_v56 = vld [vmem:[%s1765_s2 + $0x2] ss:$0 sm:$0xff]  ;;  %v1312_v12 = vld [vmem:[#allocation5 + $0x148] sm:$0xff]  }
  0x64   : > { %1120 = vmatpush3.bf16.msra.mxu1 %v1282_v7 }
  0x65   : > { %1121 = vmatprep.subr.bf16.mxu1 %v1453_v0  ;;  %1136 = vmatpush3.bf16.msra.mxu0 %v1288_v13  ;;  %v1313_v13 = vld [vmem:[#allocation5 + $0x150] sm:$0xff]  }
  0x66   : > { %1137 = vmatprep.subr.bf16.mxu0 %v1453_v0 }
  0x68   : > { %1122 = vmatpush3.bf16.msra.mxu1 %v1283_v8 }
  0x69   : > { %1123 = vmatprep.subr.bf16.mxu1 %v1453_v0  ;;  %1138 = vmatpush3.bf16.msra.mxu0 %v1289_v14  ;;  %v1314_v14 = vld [vmem:[#allocation5 + $0x158] sm:$0xff]  }
  0x6a   : > { %1139 = vmatprep.subr.bf16.mxu0 %v1453_v0 }
  0x6c   : > { %1124 = vmatpush3.bf16.msra.mxu1 %v1284_v9 }
  0x6d   : > { %1125 = vmatprep.subr.bf16.mxu1 %v1453_v0  ;;  %1140 = vmatpush3.bf16.msra.mxu0 %v1290_v15  ;;  %v1315_v15 = vld [vmem:[#allocation5 + $0x160] sm:$0xff]  }
  0x6e   : > { %1141 = vmatprep.subr.bf16.mxu0 %v1453_v0 }
  0x70   : > { %1126 = vmatpush3.bf16.msra.mxu1 %v1285_v10 }
  0x71   : > { %1127 = vmatprep.subr.bf16.mxu1 %v1453_v0  ;;  %1142 = vmatpush3.bf16.msra.mxu0 %v1291_v16  ;;  %v1316_v16 = vld [vmem:[#allocation5 + $0x168] sm:$0xff]  }
  0x72   : > { %1143 = vmatprep.subr.bf16.mxu0 %v1453_v0 }
  0x74   : > { %1128 = vmatpush3.bf16.msra.mxu1 %v1286_v11 }
  0x75   : > { %1153 = vmatprep.subr.bf16.mxu1 %v1453_v0  ;;  %1144 = vmatpush3.bf16.msra.mxu0 %v1292_v17  ;;  %v1317_v17 = vld [vmem:[#allocation5 + $0x170] sm:$0xff]  }
  0x76   : > { %1145 = vmatprep.subr.bf16.mxu0 %v1453_v0 }
  0x79   : > { %1146 = vmatpush3.bf16.msra.mxu0 %v1293_v28 }
  0x7a   : > { %1147 = vmatprep.subr.bf16.mxu0 %v1453_v0 }
  0x7d   : > { %1148 = vmatpush3.bf16.msra.mxu0 %v1294_v29 }
  0x7e   : > { %1173 = vmatprep.subr.bf16.mxu0 %v1453_v0 }
 0x132   : > { %v302_v19 = vpop.f32.mrb[0].mxu0 }
 0x133   : > { %v303_v20 = vadd.f32 %v999_v18, %v302_v19  ;;  %v1111_v21 = vpop.f32.mrb[1].mxu0 }
 0x134   : > { %v305_v22 = vpop.f32.mrb[2].mxu0 }
 0x135   : > { %v306_v23 = vadd.f32 %v999_v18, %v305_v22  ;;  %v1112_v24 = vpop.f32.mrb[3].mxu0  ;;  %v309_v25 = vmax.f32 %v303_v20, 0.0  ;;  %v1318_v18 = vld [vmem:[#allocation5 + $0x178] sm:$0xff]  }
 0x137   : > { %v310_v26 = vmax.f32 %v306_v23, 0.0  ;;  %v785_v23 = vlaneseq }
 0x139   : > { %v311_v27 = vpack.c.bf16 %v310_v26, %v309_v25  ;;  %v786_v24 = vshrl.u32 %v785_v23, 7  ;;  %v1024_v25 = vld [vmem:[%s1765_s2 + $0x3] sm:$0x1] }
 0x13b   : > { %1130 = vmatmul.mubr.bf16.vlgmr.msra.gmra.mrb[0].mxu1 %v311_v27  ;;  %v787_v26 = vsub.s32 0, %v786_v24 }
 0x13c   : > { %1169 = vmatprep.mubr.msk.bf16.mxu1 %vm1454_vm0, %v1453_v0  ;;  %1154 = vmatpush3.bf16.msra.mxu1 %v1295_v30 }
 0x13d   : > { %1155 = vmatprep.subr.bf16.mxu1 %v1453_v0 }
 0x140   : > { %1156 = vmatpush3.bf16.msra.mxu1 %v1296_v31 }
 0x141   : > { %1157 = vmatprep.subr.bf16.mxu1 %v1453_v0 }
 0x144   : > { %1158 = vmatpush3.bf16.msra.mxu1 %v1297_v32 }
 0x145   : > { %1159 = vmatprep.subr.bf16.mxu1 %v1453_v0 }
 0x148   : > { %1160 = vmatpush3.bf16.msra.mxu1 %v1298_v33 }
 0x149   : > { %1161 = vmatprep.subr.bf16.mxu1 %v1453_v0 }
 0x14c   : > { %1162 = vmatpush3.bf16.msra.mxu1 %v1299_v34 }
 0x14d   : > { %1163 = vmatprep.subr.bf16.mxu1 %v1453_v0 }
 0x150   : > { %1164 = vmatpush3.bf16.msra.mxu1 %v1301_v35 }
 0x151   : > { %1165 = vmatprep.subr.bf16.mxu1 %v1453_v0 }
 0x154   : > { %1166 = vmatpush3.bf16.msra.mxu1 %v1303_v48 }
 0x155   : > { %1167 = vmatprep.subr.bf16.mxu1 %v1453_v0 }
 0x158   : > { %1168 = vmatpush3.bf16.msra.mxu1 %v1305_v50 }
 0x159   : > { %1193 = vmatprep.subr.bf16.mxu1 %v1453_v0 }
 0x20e   : > { %v419_v37 = vpop.f32.mrb[0].mxu1 }
 0x20f   : > { %v420_v38 = vadd.f32 %v1005_v36, %v419_v37  ;;  %v1131_v39 = vpop.f32.mrb[1].mxu1  ;;  %v1041_v37 = vld [vmem:[%s1766_s3] ss:$0 sm:$0xff] }
 0x210   : > { %v422_v40 = vpop.f32.mrb[2].mxu1 }
 0x211   : > { %v423_v41 = vadd.f32 %v1005_v36, %v422_v40  ;;  %v1132_v42 = vpop.f32.mrb[3].mxu1  ;;  %v426_v43 = vmax.f32 %v420_v38, 0.0 }
 0x213   : > { %v427_v44 = vmax.f32 %v423_v41, 0.0 }
 0x215   : > { %v428_v46 = vpack.c.bf16 %v427_v44, %v426_v43 }
 0x217   : > { %1150 = vmatmul.mubr.bf16.vlgmr.msra.gmra.mrb[4].mxu0 %v428_v46 }
 0x218   : > { %1174 = vmatpush3.bf16.msra.mxu0 %v1300_v45  ;;  %1189 = vmatprep.mubr.msk.bf16.mxu0 %vm1454_vm0, %v1453_v0 }
 0x219   : > { %1175 = vmatprep.subr.bf16.mxu0 %v1453_v0 }
 0x21c   : > { %1176 = vmatpush3.bf16.msra.mxu0 %v1302_v47 }
 0x21d   : > { %1177 = vmatprep.subr.bf16.mxu0 %v1453_v0 }
 0x220   : > { %1178 = vmatpush3.bf16.msra.mxu0 %v1304_v49 }
 0x221   : > { %1179 = vmatprep.subr.bf16.mxu0 %v1453_v0 }
 0x224   : > { %1180 = vmatpush3.bf16.msra.mxu0 %v1306_v51 }
 0x225   : > { %1181 = vmatprep.subr.bf16.mxu0 %v1453_v0 }
 0x228   : > { %1182 = vmatpush3.bf16.msra.mxu0 %v1307_v52 }
 0x229   : > { %1183 = vmatprep.subr.bf16.mxu0 %v1453_v0 }
 0x22c   : > { %1184 = vmatpush3.bf16.msra.mxu0 %v1308_v53 }
 0x22d   : > { %1185 = vmatprep.subr.bf16.mxu0 %v1453_v0 }
 0x230   : > { %1186 = vmatpush3.bf16.msra.mxu0 %v1309_v54 }
 0x231   : > { %1187 = vmatprep.subr.bf16.mxu0 %v1453_v0 }
 0x234   : > { %1188 = vmatpush3.bf16.msra.mxu0 %v1310_v55 }
 0x2ea   : > { %v536_v57 = vpop.f32.mrb[4].mxu0 }
 0x2eb   : > { %v1151_v58 = vpop.f32.mrb[5].mxu0  ;;  %v537_v60 = vadd.f32 %v1015_v56, %v536_v57 }
 0x2ec   : > { %v539_v59 = vpop.f32.mrb[6].mxu0 }
 0x2ed   : > { %v540_v61 = vadd.f32 %v1015_v56, %v539_v59  ;;  %v1152_v62 = vpop.f32.mrb[7].mxu0 }
 0x2ef   : > { %v543_v1 = vpack.c.bf16 %v540_v61, %v537_v60 }
 0x2f1   : > { %v687_v2 = vunpack.i.l.bf16 %v543_v1  ;;  %v688_v3 = vunpack.i.h.bf16 %v543_v1  ;;  %1170 = vmatmul.mubr.bf16.vlgmr.msra.gmra.mrb[4].mxu1 %v543_v1 }
 0x2f2   : > { %1194 = vmatpush3.bf16.msra.mxu1 %v1311_v63  ;;  %1209 = vmatprep.mubr.msk.bf16.mxu1 %vm1454_vm0, %v1453_v0 }
 0x2f3   : > { %v689_v4 = vmax.f32 %v687_v2, %v688_v3  ;;  %1195 = vmatprep.subr.bf16.mxu1 %v1453_v0 }
 0x2f5   : > { %v690_v5 = vrot.slane %v689_v4, 4 }
 0x2f6   : > { %1196 = vmatpush3.bf16.msra.mxu1 %v1312_v12 }
 0x2f7   : > { %v691_v6 = vmax.f32 %v689_v4, %v690_v5  ;;  %1197 = vmatprep.subr.bf16.mxu1 %v1453_v0 }
 0x2f9   : > { %v692_v7 = vrot.slane %v691_v6, 2 }
 0x2fa   : > { %1198 = vmatpush3.bf16.msra.mxu1 %v1313_v13 }
 0x2fb   : > { %v693_v8 = vmax.f32 %v691_v6, %v692_v7  ;;  %1199 = vmatprep.subr.bf16.mxu1 %v1453_v0 }
 0x2fd   : > { %v694_v9 = vrot.slane %v693_v8, 1 }
 0x2fe   : > { %1200 = vmatpush3.bf16.msra.mxu1 %v1314_v14 }
 0x2ff   : > { %v695_v10 = vmax.f32 %v693_v8, %v694_v9  ;;  %1201 = vmatprep.subr.bf16.mxu1 %v1453_v0 }
 0x301   : > { %v696_v11 = vpack.i.bf16 %v695_v10, %v695_v10 }
 0x302   : > { %1202 = vmatpush3.bf16.msra.mxu1 %v1315_v15 }
 0x303   : > { %1190 = vmatmul.mubr.bf16.vlgmr.msra.gmra.mrb[8].mxu0 %v696_v11  ;;  %1203 = vmatprep.subr.bf16.mxu1 %v1453_v0 }
 0x306   : > { %1204 = vmatpush3.bf16.msra.mxu1 %v1316_v16 }
 0x307   : > { %1205 = vmatprep.subr.bf16.mxu1 %v1453_v0 }
 0x30a   : > { %1206 = vmatpush3.bf16.msra.mxu1 %v1317_v17 }
 0x30b   : > { %1207 = vmatprep.subr.bf16.mxu1 %v1453_v0 }
 0x30e   : > { %1208 = vmatpush3.bf16.msra.mxu1 %v1318_v18 }
 0x3c4   : > { %v680_v19 = vpop.f32.mrb[4].mxu1 }
 0x3c5   : > { %v1171_v20 = vpop.f32.mrb[5].mxu1 }
 0x3c6   : > { %v683_v21 = vpop.f32.mrb[6].mxu1 }
 0x3c7   : > { %v1172_v22 = vpop.f32.mrb[7].mxu1 }
 0x3d6   : > { %v779_v27 = vpop.f32.mrb[8].mxu0 }
 0x3d7   : > { %v780_v28 = vadd.f32 %v1024_v25, %v779_v27  ;;  %v1191_v29 = vpop.f32.mrb[9].mxu0 }
 0x3d8   : > { %v782_v30 = vpop.f32.mrb[10].mxu0 }
 0x3d9   : > { %v788_v0 = vrot.slane %v780_v28, %v787_v26  ;;  %v1192_v31 = vpop.f32.mrb[11].mxu0 }
 0x3db   : > { %v789_v32 = vadd.f32 %v788_v0, %v680_v19  ;;  %v790_v33 = vadd.f32 %v788_v0, %v683_v21 }
 0x3dd   : > { %v791_v34 = vmax.f32 %v789_v32, 0.0  ;;  %v792_v35 = vmax.f32 %v790_v33, 0.0 }
 0x3df   : > { %v793_v36 = vpack.c.bf16 %v792_v35, %v791_v34 }
 0x3e1   : > { %1210 = vmatmul.mubr.bf16.vlgmr.msra.gmra.mrb[8].mxu1 %v793_v36 }
 0x4b4   : > { %v882_v38 = vpop.f32.mrb[8].mxu1 }
 0x4b5   : > { %v883_v39 = vadd.f32 %v1041_v37, %v882_v38  ;;  %v1211_v40 = vpop.f32.mrb[9].mxu1 }
 0x4b6   : > { %v885_v41 = vpop.f32.mrb[10].mxu1 }
 0x4b7   : > { %889 = vst.msk [vmem:[%s230_s25] sm:$0xff] %vm264_vm1, %v883_v39  ;;  %v886_v42 = vadd.f32 %v1041_v37, %v885_v41  ;;  %v1212_v43 = vpop.f32.mrb[11].mxu1 }
 0x4b9   : > { %890 = vst.msk [vmem:[%s230_s25 + $0x8] sm:$0xff] %vm264_vm1, %v886_v42 }
 0x4ba   : > { %1390 = shalt.err (!%p1387_p7)
}
 0x4bb   : > { %s1391_s28 = scalar_lea.hbm %s1717_s21, 256  ;;  %s1395_s7 = scalar_lea.hbm %s1767_s4, 512 }
 0x4bc   : > { %p1392_p9 = scmp.ne.s32.totalorder %s1717_s21, %s1391_s28  ;;  %p1396_p5 = scmp.lt.u32.totalorder %s1717_s21, %s1767_s4 }
 0x4bd   : > { %p1397_p2 = scmp.lt.u32.totalorder %s1395_s7, %s1391_s28  ;;  %p1399_p4 = scmp.lt.u32.totalorder %s1391_s28, %s1717_s21 }
 0x4be   : > { %p1393_p1 = pnand %p1392_p9, %p1577_p12 }
 0x4bf   : > { %p1398_p11 = por %p1397_p2, %p1396_p5 }
 0x4c0   : > { %p1394_p0 = pneg %p1393_p1 }
 0x4c1   : > { %p1400_p6 = por %p1399_p4, %p1398_p11 }
 0x4c3   : > { %p1401_p8 = pnand %p1400_p6, %p1394_p0 }
 0x4c5   : > { %1404 = shalt.err (!%p1401_p8)
}
 0x4c6   : > { %s1456_s25 = smov 128   ;;  %s1457_s20 = smov 8  }
 0x4c7   : > { %1219 = dma.vmem_to_hbm [thread:$0]  (%p1577_p12), %s1712_s14, 256, %s1717_s21, %s892_s19, %s1456_s25, %s1456_s25, %s1457_s20  }
 0x4c8 PF: > { %s920_s5 = sand.u32 1, %s1435_s15   ;;  %p1782_p10 = scmp.ne.s32.totalorder %s1772_s22, 0 }
 0x4c9   : > { %p1783_p13 = scmp.ge.s32.totalorder %s1447_s18, 2  ;;  %s921_s6 = scalar_lea.sflag [#allocation4], %s920_s5 }
 0x4cb   : > { %p1230_p3 = pnand %p1783_p13, %p1782_p10 }
 0x4cd   : > { %1430 = dma.done.wait (!%p1230_p3), %s921_s6, 256  }
 0x4ce   : > { %1432 = vsyncadd (!%p1230_p3), %s921_s6, 4294967040  ;;  %p18_p7 = scmp.ge.s32.totalorder %s1539_s27, 4   ;;  %s1784_s15 = smov %s1439_s16 }
 0x4cf   : > { %s1785_s16 = smov %s1443_s17  ;;  %s1786_s17 = smov %s1573_s24 }
 0x4d0   : > { %s1787_s18 = smov %s1539_s27  ;;  %20 = sbr.rel (!%p18_p7) target bundleno = 6 (0x6), region = 93 }
 0x4d7   :  { %926 = vsyncpa [#allocation3], 1 }
 0x4d8   :  { %928 = vsyncpa [#allocation3 + $0x1], 1 }
 0x4d9   :  { %929 = vsyncpa [#allocation6], 1 }
 0x4da   :  { %930 = vsyncpa [#allocation4], 1 }
 0x4db   :  { %932 = vsyncpa [#allocation4 + $0x1], 1 }

</bundles_post_ra>
